<compile_context>
chip_gen: v5e
topology: v5e:2x2
jax: 0.10.0
libtpu: 0.0.40
codegen_flags: <defaults>
</compile_context>

<pallas_src>
import math

import jax
import jax.numpy as jnp
from jax.experimental import pallas as pl
from jax.experimental.pallas import tpu as pltpu


_HALF_LOG_2PI = 0.5 * math.log(2.0 * math.pi)

_LANE = 128            # vreg lane width
_SUBLANE = 8           # f32 sublane count
_MAX_COLS = 2048       # lane-dense slab width cap
_MAX_TILE_ROWS = 512   # 512 x 2048 f32 = 4 MiB per-tile cap (HBM roofline)
_SMALL_BYTES = 2 << 20 # below this per f32 array: single block, no grid


def _gaussian_logp_kernel(scalars_ref, x_ref, y_ref, logp_ref):
    # scalars_ref (SMEM, (2,) f32): [coef, neg_const]
    #   coef      = -0.5 / sigma^2
    #   neg_const = -(log_sigma + 0.5*log(2*pi))
    coef = scalars_ref[0]
    neg_const = scalars_ref[1]
    d = y_ref[...].astype(jnp.float32) - x_ref[...].astype(jnp.float32)
    # log N(y | x, sigma) = coef * d^2 + neg_const
    logp_ref[...] = neg_const + coef * (d * d)


def _round_up(v, m):
    return ((v + m - 1) // m) * m


def _pick_cols(total):
    """Lane-dense slab width: a multiple of 128, independent of (h, w)."""
    if total < _LANE:
        return _LANE
    # Prefer a width that divides `total` exactly (avoids a padding copy).
    best = None
    cap = min(total, _MAX_COLS)
    for c in range(_LANE, cap + 1, _LANE):
        if total % c == 0:
            best = c
    if best is not None:
        return best
    return min(_MAX_COLS, _round_up(total, _LANE))


def _largest_divisor_tile(extent, unit, cap):
    """Largest multiple of `unit` dividing `extent`, <= cap (fallback: extent)."""
    best = None
    for t in range(unit, min(extent, cap) + 1, unit):
        if extent % t == 0:
            best = t
    return best if best is not None else extent


def gaussian_noise_likelihood(x, y, log_outputsigma):
    """Normal(loc=x, scale=exp(log_outputsigma)) evaluated at y.

    Returns (loc, scale, log_prob):
      loc      : x itself (no HBM copy),
      scale    : scalar sigma (consumers can broadcast lazily; materializing a
                 full-array scale would add ~1/3 extra HBM traffic),
      log_prob : f32, same shape as x, computed by the Pallas kernel.
    """
    shape = x.shape
    total = math.prod(shape)

    # Scalar prep hoisted out of the kernel: one EUP exp + folded constants.
    log_sigma = jnp.asarray(log_outputsigma, jnp.float32)
    sigma = jnp.exp(log_sigma)
    inv_sigma = jnp.exp(-log_sigma)
    coef = -0.5 * inv_sigma * inv_sigma          # saves one VALU mul per element
    neg_const = -(log_sigma + jnp.float32(_HALF_LOG_2PI))
    scalars = jnp.stack([coef, neg_const]).astype(jnp.float32)  # SMEM (2,)

    # Lane-dense 2-D slab, decoupled from (h, w).  Inputs keep their native
    # dtype in HBM (bf16 inputs halve input traffic); kernel upcasts to f32.
    cols = _pick_cols(total)
    padded = _round_up(total, cols)
    rows = padded // cols

    per_array_f32 = rows * cols * 4
    small = per_array_f32 <= _SMALL_BYTES

    if not small:
        rows = _round_up(rows, _SUBLANE)
        padded = rows * cols

    def _as_slab(a):
        flat = a.reshape(-1)
        if padded != total:
            flat = jnp.pad(flat, (0, padded - total))
        return flat.reshape(rows, cols)

    x2d = _as_slab(x)
    y2d = _as_slab(y)

    if small:
        # Single block, no grid: one DMA in/out, no pipeline prologue/epilogue,
        # no per-step overhead.  Cheapest path for toy / sub-2 MiB inputs.
        logp2d = pl.pallas_call(
            _gaussian_logp_kernel,
            out_shape=jax.ShapeDtypeStruct((rows, cols), jnp.float32),
            in_specs=[
                pl.BlockSpec(memory_space=pltpu.SMEM),   # scalars
                pl.BlockSpec(memory_space=pltpu.VMEM),   # x
                pl.BlockSpec(memory_space=pltpu.VMEM),   # y
            ],
            out_specs=pl.BlockSpec(memory_space=pltpu.VMEM),
        )(scalars, x2d, y2d)
    else:
        # Streaming path: up to 512 x 2048 f32 tiles (4 MiB) so the ~0.35 us
        # per-step overhead is amortized and HBM roofline is reached.  The row
        # axis is "parallel" so v7x shards >=2 steps across its 2 TensorCores.
        tile_r = _largest_divisor_tile(rows, _SUBLANE, _MAX_TILE_ROWS)
        grid = (rows // tile_r,)

        # Double-buffered pipelined footprint: 2 * (x_tile + y_tile + out_tile).
        tile_in = tile_r * cols * (x.dtype.itemsize + y.dtype.itemsize)
        tile_out = tile_r * cols * 4
        footprint = 2 * (tile_in + tile_out)
        # v5e's scoped-VMEM default (16 MiB) is too small for 4 MiB f32 tiles;
        # keep the cap well under v7x's 64 MiB physical VMEM.
        vmem_limit = min(48 << 20, max(16 << 20, footprint + (8 << 20)))

        logp2d = pl.pallas_call(
            _gaussian_logp_kernel,
            out_shape=jax.ShapeDtypeStruct((rows, cols), jnp.float32),
            grid=grid,
            in_specs=[
                pl.BlockSpec(memory_space=pltpu.SMEM),            # scalars
                pl.BlockSpec((tile_r, cols), lambda i: (i, 0)),   # x
                pl.BlockSpec((tile_r, cols), lambda i: (i, 0)),   # y
            ],
            out_specs=pl.BlockSpec((tile_r, cols), lambda i: (i, 0)),
            compiler_params=pltpu.CompilerParams(
                dimension_semantics=("parallel",),
                vmem_limit_bytes=vmem_limit),
        )(scalars, x2d, y2d)

    logp_flat = logp2d.reshape(-1)
    if padded != total:
        logp_flat = logp_flat[:total]
    logp = logp_flat.reshape(shape)

    # TODO(synk): if the consumer immediately reduces log_prob (summed
    # log-likelihood), fuse the reduction into the kernel (per-tile partial
    # sums with pl.when init/finalize) to drop the logp HBM writeback.
    loc = x                 # Normal loc — no copy
    scale = sigma           # scalar sigma — broadcast lazily downstream if needed
    return loc, scale, logp


if __name__ == "__main__":
    key = jax.random.PRNGKey(0)
    kx, ky = jax.random.split(key)

    # Small NCHW inputs, consistent with a conv-style data layout.
    x = jax.random.normal(kx, (2, 4, 16, 16), dtype=jnp.float32)
    y = jax.random.normal(ky, (2, 4, 16, 16), dtype=jnp.float32)

    # Deterministic parameter init: hyperparameters['outputsigma'] = 1.0
    # (get_default_hyperparameters), so log_outputsigma = log(1.0) = 0.
    outputsigma_init = jnp.float32(1.0)
    log_outputsigma = jnp.log(outputsigma_init)

    loc, scale, logp = gaussian_noise_likelihood(x, y, log_outputsigma)
    jax.block_until_ready((loc, scale, logp))

    # Reference check against plain JAX.
    sigma = jnp.exp(log_outputsigma)
    ref_logp = (-0.5 * ((y - x) / sigma) ** 2
                - jnp.log(sigma) - 0.5 * jnp.log(2.0 * jnp.pi))
    assert jnp.allclose(loc, x, atol=1e-6)
    assert jnp.allclose(scale, sigma, atol=1e-6)
    assert jnp.allclose(logp, ref_logp, atol=1e-5)

    print("KERNEL_OK")
</pallas_src>

<mosaic_0001>
module attributes {stable_mosaic.version = 11 : i64} {
  func.func @_gaussian_logp_kernel(%arg0: memref<2xf32, #tpu.memory_space<smem>>, %arg1: memref<1x2048xf32, #tpu.memory_space<vmem>>, %arg2: memref<1x2048xf32, #tpu.memory_space<vmem>>, %arg3: memref<1x2048xf32, #tpu.memory_space<vmem>>) attributes {dimension_semantics = [], scalar_prefetch = 0 : i64, scratch_operands = 0 : i64, tpu.core_type = #tpu.core_type<tc>} {
    %c0 = arith.constant 0 : index
    %0 = memref.load %arg0[%c0] : memref<2xf32, #tpu.memory_space<smem>>
    %c1 = arith.constant 1 : index
    %1 = memref.load %arg0[%c1] : memref<2xf32, #tpu.memory_space<smem>>
    %c0_0 = arith.constant 0 : index
    %c0_1 = arith.constant 0 : index
    %2 = vector.load %arg2[%c0_0, %c0_1] : memref<1x2048xf32, #tpu.memory_space<vmem>>, vector<1x2048xf32>
    %c0_2 = arith.constant 0 : index
    %c0_3 = arith.constant 0 : index
    %3 = vector.load %arg1[%c0_2, %c0_3] : memref<1x2048xf32, #tpu.memory_space<vmem>>, vector<1x2048xf32>
    %4 = arith.subf %2, %3 : vector<1x2048xf32>
    %5 = arith.mulf %4, %4 : vector<1x2048xf32>
    %6 = vector.broadcast %0 : f32 to vector<1x2048xf32>
    %7 = arith.mulf %6, %5 : vector<1x2048xf32>
    %8 = vector.broadcast %1 : f32 to vector<1x2048xf32>
    %9 = arith.addf %8, %7 : vector<1x2048xf32>
    %c0_4 = arith.constant 0 : index
    %c0_5 = arith.constant 0 : index
    %10 = vector.load %arg3[%c0_4, %c0_5] : memref<1x2048xf32, #tpu.memory_space<vmem>>, vector<1x2048xf32>
    tpu.vector_store %arg3[%c0_4, %c0_5], %9 {strides = array<i32>} : memref<1x2048xf32, #tpu.memory_space<vmem>>, vector<1x2048xf32>,
    return
  }
}

</mosaic_0001>

<bundles_post_ra>
// kernel: tpu_custom_call.1
= control target key start
LH: loop header
LB: loop body
LE: loop exit
PB: predicated region body
PF: predicated region fallthrough
CT: control target
= control target key end

     0   :  { %8 = vsyncpa [#allocation5], 0  ;;  %s226_s0 = inlined_call_operand.hbm [shape: f32[2], index: 0, kind: input, shape index: {}]   ;;  %s227_s1 = inlined_call_operand.hbm [shape: f32[1,2048], index: 1, kind: input, shape index: {}]   ;;  %s228_s2 = inlined_call_operand.hbm [shape: f32[1,2048], index: 2, kind: input, shape index: {}]   ;;  %s229_s3 = inlined_call_operand.hbm [shape: f32[1,2048], index: 3, kind: output, shape index: {}]  }
   0x1   :  { %9 = vsyncpa [#allocation3], 0 }
   0x2   :  { %10 = vsyncpa [#allocation8], 0 }
   0x3   :  { %11 = vsyncpa [#allocation4], 0  ;;  %s17_s14 = sshll.u32 %s226_s0, 4  ;;  %s26_s17 = sshll.u32 %s227_s1, 4  ;;  %s18_s14 = int_to_ptr.hbm [resolvable:$true] %s17_s14  ;;  %s27_s17 = int_to_ptr.hbm [resolvable:$true] %s26_s17 }
   0x4   :  { %s190_s18 = smov [#allocation2]   ;;  %s191_s19 = smov [#allocation6]  }
   0x5   :  { %20 = dma.hbm_to_smem %s18_s14, 16, %s190_s18, [#allocation5]  }
   0x6   :  { %s28_s20 = sshll.u32 %s191_s19, 4  ;;  %s37_s23 = sshll.u32 %s228_s2, 4  ;;  %s29_s20 = int_to_ptr.vmem [resolvable:$true] %s28_s20  ;;  %s38_s23 = int_to_ptr.hbm [resolvable:$true] %s37_s23 }
   0x7   :  { %31 = dma.hbm_to_vmem [thread:$0]  %s27_s17, 256, %s29_s20, [#allocation3]  }
   0x8   :  { %s192_s24 = smov [#allocation7]  }
   0x9   :  { %s39_s25 = sshll.u32 %s192_s24, 4  ;;  %s40_s25 = int_to_ptr.vmem [resolvable:$true] %s39_s25 }
   0xa   :  { %42 = dma.hbm_to_vmem [thread:$0]  %s38_s23, 256, %s40_s25, [#allocation8]  }
   0xb   :  { %182 = dma.done.wait [#allocation5], 16  }
   0xc   :  { %183 = vsyncadd [#allocation5], 4294967280 }
   0xd   :  { %184 = dma.done.wait [#allocation3], 256  }
   0xe   :  { %185 = vsyncadd [#allocation3], 4294967040 }
   0xf   :  { %186 = dma.done.wait [#allocation8], 256  }
  0x10   :  { %187 = vsyncadd [#allocation8], 4294967040 }
  0x11   :  { %55 = sfence }
  0x12   :  { %s56_s0 = sld [smem:[#allocation2]]  ;;  %v58_v0 = vld [vmem:[#allocation7] sm:$0xff]  ;;  %v60_v1 = vld [vmem:[#allocation6] sm:$0xff]  ;;  %v59_v2 = vld [vmem:[#allocation7 + $0x8] sm:$0xff]  ;;  %s193_s2 = smov [#allocation9]  }
  0x13   :  { %s93_s1 = sld [smem:[#allocation2 + $0x1]]  ;;  %v62_v3 = vsub.f32 %v58_v0, %v60_v1  ;;  %v61_v4 = vld [vmem:[#allocation6 + $0x8] sm:$0xff]  ;;  %s79_s26 = sshll.u32 %s193_s2, 4  ;;  %s80_s26 = int_to_ptr.vmem [resolvable:$true] %s79_s26 }
  0x14   :  { %v63_v5 = vsub.f32 %v59_v2, %v61_v4  ;;  %s81_s29 = sshll.u32 %s229_s3, 4  ;;  %s82_s29 = int_to_ptr.hbm [resolvable:$true] %s81_s29 }
  0x15   :  { %v64_v6 = vmul.f32 %v62_v3, %v62_v3 }
  0x16   :  { %v65_v7 = vmul.f32 %v63_v5, %v63_v5 }
  0x18   :  { %v66_v8 = vstv %s56_s0 }
  0x19   :  { %v67_v9 = vmul.f32 %v66_v8, %v64_v6  ;;  %v69_v10 = vstv %s93_s1  ;;  %v68_v11 = vmul.f32 %v66_v8, %v65_v7 }
  0x1b   :  { %v70_v12 = vadd.f32 %v69_v10, %v67_v9  ;;  %v71_v13 = vadd.f32 %v69_v10, %v68_v11 }
  0x1d   :  { %72 = vst [vmem:[#allocation9] sm:$0xff] %v70_v12 }
  0x1e   :  { %73 = vst [vmem:[#allocation9 + $0x8] sm:$0xff] %v71_v13 }
  0x1f   :  { %84 = dma.vmem_to_hbm [thread:$0]  %s80_s26, 256, %s82_s29, [#allocation4]  }
  0x20   :  { %188 = dma.done.wait [#allocation4], 256  }
  0x21   :  { %189 = vsyncadd [#allocation4], 4294967040 }
  0x22   :  { %89 = vsyncpa [#allocation3], 1 }
  0x23   :  { %90 = vsyncpa [#allocation8], 1 }
  0x24   :  { %91 = vsyncpa [#allocation4], 1 }
  0x25   :  { %92 = vsyncpa [#allocation5], 1 }

</bundles_post_ra>
